<compile_context>
chip_gen: v5e
topology: v5e:2x2
jax: 0.10.0
libtpu: 0.0.40
codegen_flags: <defaults>
</compile_context>

<pallas_src>
import math
import functools

import jax
import jax.numpy as jnp
from jax import lax
from jax.experimental import pallas as pl
from jax.experimental.pallas import tpu as pltpu


def _self_attn_kernel(x_ref, w_ref, mask_ref, o_ref, qkv_ref, oacc_ref, *,
                      heads, tq):
    # x_ref:    (1, S, E)   full sequence of current batch element (reused across q tiles)
    # w_ref:    (E, 3E)     fused [scale*Wq.T | Wk.T | Wv.T]   (grid-resident, single-buffered)
    # mask_ref: (tq, S)     query-tile slice of the multiplicative mask
    # o_ref:    (1, tq, E)  output rows for this query tile (already (B, S, E) layout)
    # qkv_ref:  (S, 3E)     x.dtype scratch: fused projection for this batch element
    # oacc_ref: (tq, E) f32 scratch: per-head output accumulator -> one lane-dense store
    qi = pl.program_id(1)
    S = x_ref.shape[1]
    E = x_ref.shape[2]
    D = E // heads

    @pl.when(qi == 0)
    def _():
        # One fused QKV projection per batch element (wide-N MXU matmul),
        # f32 accumulation, stored in x.dtype and resident for all query tiles.
        qkv_ref[...] = jnp.dot(
            x_ref[0], w_ref[...], preferred_element_type=jnp.float32
        ).astype(qkv_ref.dtype)

    row0 = pl.multiple_of(qi * tq, tq)
    mask_tile = mask_ref[...].astype(jnp.float32)          # (tq, S)

    for h in range(heads):                                  # static unroll; heads is small
        # Slice only the columns actually used (no (tq, 3E) slab load).
        q_h = qkv_ref[pl.ds(row0, tq), h * D:(h + 1) * D]               # (tq, D)
        k_h = qkv_ref[:, E + h * D:E + (h + 1) * D]                     # (S, D)
        v_h = qkv_ref[:, 2 * E + h * D:2 * E + (h + 1) * D]             # (S, D)

        # q_h @ k_h^T without materializing a transpose (contract last dims).
        # 1/sqrt(E) is already folded into the Q weight columns.
        sims = lax.dot_general(q_h, k_h, (((1,), (1,)), ((), ())),
                               preferred_element_type=jnp.float32)      # (tq, S)
        logits = sims * mask_tile                           # multiplicative mask

        m = jnp.max(logits, axis=-1, keepdims=True)
        p = jnp.exp(logits - m)
        denom = jnp.sum(p, axis=-1, keepdims=True)
        attn = p * pl.reciprocal(denom, approx=False)       # EUP, off the VALU slot

        # Cast probabilities to staging dtype (bf16 MXU rate when inputs are bf16),
        # accumulate in f32, write the head's D-wide slab into the output accumulator.
        oacc_ref[:, h * D:(h + 1) * D] = jnp.dot(
            attn.astype(qkv_ref.dtype), v_h, preferred_element_type=jnp.float32)

    # Single lane-dense E-wide store, output already in (B, S, E) layout.
    o_ref[0] = oacc_ref[...].astype(o_ref.dtype)


def _default_max_q_tile():
    """128 on v5e (128-tall MXU), 256 on v6e/v7x.  Safe fallback: 256."""
    try:
        name = str(pltpu.get_tpu_info().chip_version).lower()
        if "v5" in name:
            return 128
    except Exception:
        pass
    return 256


def _vmem_cap_bytes():
    """Physical VMEM with ~15% headroom; safe fallback 64 MiB (v7x physical)."""
    try:
        return int(pltpu.get_tpu_info().vmem_capacity_bytes * 0.85)
    except Exception:
        return 64 * 1024 * 1024


def _pick_q_tile(S, dtype, max_tile):
    """Largest tile <= max_tile that divides S, dtype-aware (bf16 needs x16),
    bounded so the per-head (tq, S) f32 logits stay ~1 MiB."""
    if S <= max_tile:
        return S
    min_mult = 16 if jnp.dtype(dtype) == jnp.bfloat16 else 8
    cap = max(min_mult, min(max_tile, (1 << 20) // max(4 * S, 1)))
    for t in range(cap, min_mult - 1, -1):
        if S % t == 0 and t % min_mult == 0:
            return t
    # TODO(synk): prime-ish S falls back to a single full-S tile; needs padding
    # or an online-softmax KV-chunk loop to bound VMEM for long sequences.
    return S


def self_attention(x, wq, wk, wv, mask, heads, max_q_tile=None):
    """x: (B, S, E); wq/wk/wv: torch-style Linear weights (y = x @ W.T);
    mask: (S, S) multiplicative mask or None. Returns (B, S, E)."""
    B, S, E = x.shape
    assert E % heads == 0
    if max_q_tile is None:
        max_q_tile = _default_max_q_tile()
    tq = _pick_q_tile(S, x.dtype, max_q_tile)
    assert S % tq == 0

    if mask is None:
        mask = jnp.ones((S, S), dtype=jnp.float32)
    mask = mask.astype(jnp.float32)

    # Fused projection weight with the softmax scale folded into the Q columns:
    # (scale*q) @ k == scale * (q @ k), and the multiplicative mask commutes.
    scale = 1.0 / math.sqrt(E)
    w_qkv = jnp.concatenate([wq.T * scale, wk.T, wv.T], axis=1).astype(x.dtype)

    kernel = functools.partial(_self_attn_kernel, heads=heads, tq=tq)

    # VMEM budget: double-buffered x/out/mask blocks + resident fused weight
    # + staging scratch (x.dtype) + f32 output accumulator.
    itemsize = jnp.dtype(x.dtype).itemsize
    est = (2 * S * E * itemsize            # x block (double-buffered)
           + 2 * tq * E * itemsize         # out block (double-buffered)
           + 2 * 3 * E * E * itemsize      # fused weight (<=2 buffers)
           + 2 * tq * S * 4                # mask tile (double-buffered)
           + S * 3 * E * itemsize          # QKV staging scratch
           + tq * E * 4)                   # output accumulator
    vmem_limit = int(min(_vmem_cap_bytes(), max(2 * est, 16 * 1024 * 1024)))

    def build(weight_pipeline_mode):
        w_spec_kwargs = {}
        if weight_pipeline_mode is not None:
            w_spec_kwargs["pipeline_mode"] = weight_pipeline_mode
        return pl.pallas_call(
            kernel,
            out_shape=jax.ShapeDtypeStruct((B, S, E), x.dtype),
            grid_spec=pltpu.PrefetchScalarGridSpec(
                num_scalar_prefetch=0,
                grid=(B, S // tq),
                in_specs=[
                    # x: fetched once per batch element, reused across q tiles
                    pl.BlockSpec((1, S, E), lambda b, q: (b, 0, 0)),
                    # fused weight: constant block -> grid-resident, single buffer
                    pl.BlockSpec((E, 3 * E), lambda b, q: (0, 0), **w_spec_kwargs),
                    # mask: tiled along the query axis (no O(S^2) residency)
                    pl.BlockSpec((tq, S), lambda b, q: (q, 0)),
                ],
                out_specs=pl.BlockSpec((1, tq, E), lambda b, q: (b, q, 0)),
                scratch_shapes=[
                    pltpu.VMEM((S, 3 * E), x.dtype),     # QKV staging (x.dtype)
                    pltpu.VMEM((tq, E), jnp.float32),    # per-tile output accumulator
                ],
            ),
            compiler_params=pltpu.CompilerParams(
                dimension_semantics=("parallel", "arbitrary"),
                vmem_limit_bytes=vmem_limit,
            ),
        )

    hint = pl.Buffered(1) if hasattr(pl, "Buffered") else None
    if hint is not None:
        try:
            return build(hint)(x, w_qkv, mask)
        except Exception:
            pass  # fall back to default buffering for the resident weight block
    return build(None)(x, w_qkv, mask)


def _reference(x, wq, wk, wv, mask, heads):
    B, S, E = x.shape
    D = E // heads
    hp = lax.Precision.HIGHEST
    q = jnp.dot(x, wq.T, precision=hp).reshape(B, S, heads, D)
    k = jnp.dot(x, wk.T, precision=hp).reshape(B, S, heads, D)
    v = jnp.dot(x, wv.T, precision=hp).reshape(B, S, heads, D)
    sims = jnp.einsum('nqhd,nkhd->nhqk', q, k, precision=hp)
    sims = sims * mask[None, None, :, :]
    attn = jax.nn.softmax(sims / math.sqrt(E), axis=-1)
    out = jnp.einsum('nhql,nlhd->nqhd', attn, v, precision=hp)
    return out.reshape(B, S, E)


if __name__ == "__main__":
    B, S, E, HEADS = 2, 8, 32, 2

    key = jax.random.PRNGKey(0)
    kx, kq, kk, kv = jax.random.split(key, 4)

    x = jax.random.normal(kx, (B, S, E), dtype=jnp.float32)

    # Deterministic Linear-style init (uniform in [-1/sqrt(E), 1/sqrt(E)])
    bound = 1.0 / math.sqrt(E)
    wq = jax.random.uniform(kq, (E, E), jnp.float32, -bound, bound)
    wk = jax.random.uniform(kk, (E, E), jnp.float32, -bound, bound)
    wv = jax.random.uniform(kv, (E, E), jnp.float32, -bound, bound)

    # Multiplicative lower-triangular mask (S, S), as in the torch forward
    mask = jnp.tril(jnp.ones((S, S), dtype=jnp.float32))

    out = self_attention(x, wq, wk, wv, mask, HEADS)
    jax.block_until_ready(out)

    ref = _reference(x, wq, wk, wv, mask, HEADS)
    assert out.shape == (B, S, E)
    assert jnp.allclose(out, ref, atol=2e-3, rtol=2e-3), "mismatch vs reference"

    print("KERNEL_OK")
</pallas_src>

<mosaic_0001>
module attributes {stable_mosaic.version = 11 : i64} {
  func.func @_self_attn_kernel(%arg0: i32, %arg1: i32, %arg2: memref<1x8x32xf32, #tpu.memory_space<vmem>>, %arg3: memref<32x96xf32, #tpu.memory_space<vmem>>, %arg4: memref<8x8xf32, #tpu.memory_space<vmem>>, %arg5: memref<1x8x32xf32, #tpu.memory_space<vmem>>, %arg6: memref<8x96xf32, #tpu.memory_space<vmem>>, %arg7: memref<8x32xf32, #tpu.memory_space<vmem>>) attributes {dimension_semantics = [#tpu.dimension_semantics<parallel>, #tpu.dimension_semantics<arbitrary>], iteration_bounds = array<i64: 2, 1>, scalar_prefetch = 0 : i64, scratch_operands = 2 : i64, tpu.core_type = #tpu.core_type<tc>, window_params = [{transform_indices = @transform_0, window_bounds = array<i64: 1, 8, 32>}, {pipeline_mode = #tpu.pipeline_mode<synchronous>, transform_indices = @transform_1, window_bounds = array<i64: 32, 96>}, {transform_indices = @transform_2, window_bounds = array<i64: 8, 8>}, {transform_indices = @transform_3, window_bounds = array<i64: 1, 8, 32>}]} {
    %c0_i32 = arith.constant 0 : i32
    %0 = arith.cmpi eq, %arg1, %c0_i32 : i32
    %1 = arith.extui %0 : i1 to i32
    %c0_i32_0 = arith.constant 0 : i32
    %2 = arith.cmpi ne, %1, %c0_i32_0 : i32
    scf.if %2 {
      %c0_23 = arith.constant 0 : index
      %c0_24 = arith.constant 0 : index
      %c0_25 = arith.constant 0 : index
      %46 = vector.load %arg2[%c0_23, %c0_24, %c0_25] : memref<1x8x32xf32, #tpu.memory_space<vmem>>, vector<1x8x32xf32>
      %47 = vector.shape_cast %46 : vector<1x8x32xf32> to vector<8x32xf32>
      %c0_26 = arith.constant 0 : index
      %c0_27 = arith.constant 0 : index
      %48 = vector.load %arg3[%c0_26, %c0_27] : memref<32x96xf32, #tpu.memory_space<vmem>>, vector<32x96xf32>
      %cst_28 = arith.constant dense<0.000000e+00> : vector<8x96xf32>
      %49 = tpu.matmul %47, %48, %cst_28 {dimension_numbers = #tpu.dot_dimension_numbers<[1], [0], [0], [1], [0, 0, 1, 1], [], []>} : vector<8x32xf32>, vector<32x96xf32>, vector<8x96xf32> -> vector<8x96xf32>
      %c0_29 = arith.constant 0 : index
      %c0_30 = arith.constant 0 : index
      %50 = vector.load %arg6[%c0_29, %c0_30] : memref<8x96xf32, #tpu.memory_space<vmem>>, vector<8x96xf32>
      tpu.vector_store %arg6[%c0_29, %c0_30], %49 {strides = array<i32>} : memref<8x96xf32, #tpu.memory_space<vmem>>, vector<8x96xf32>,
    } else {
    }
    %c8_i32 = arith.constant 8 : i32
    %3 = arith.muli %arg1, %c8_i32 : i32
    %4 = tpu.assume_multiple %3, 8 : i32
    %c0 = arith.constant 0 : index
    %c0_1 = arith.constant 0 : index
    %5 = vector.load %arg4[%c0, %c0_1] : memref<8x8xf32, #tpu.memory_space<vmem>>, vector<8x8xf32>
    %6 = arith.index_cast %4 : i32 to index
    %c0_2 = arith.constant 0 : index
    %7 = vector.load %arg6[%6, %c0_2] : memref<8x96xf32, #tpu.memory_space<vmem>>, vector<8x16xf32>
    %c0_3 = arith.constant 0 : index
    %c32 = arith.constant 32 : index
    %8 = vector.load %arg6[%c0_3, %c32] : memref<8x96xf32, #tpu.memory_space<vmem>>, vector<8x16xf32>
    %c0_4 = arith.constant 0 : index
    %c64 = arith.constant 64 : index
    %9 = vector.load %arg6[%c0_4, %c64] : memref<8x96xf32, #tpu.memory_space<vmem>>, vector<8x16xf32>
    %cst = arith.constant dense<0.000000e+00> : vector<8x8xf32>
    %10 = tpu.matmul %7, %8, %cst {dimension_numbers = #tpu.dot_dimension_numbers<[1], [1], [0], [0], [0, 0, 1, 0], [], []>} : vector<8x16xf32>, vector<8x16xf32>, vector<8x8xf32> -> vector<8x8xf32>
    %11 = arith.mulf %10, %5 : vector<8x8xf32>
    %cst_5 = arith.constant dense<0xFF800000> : vector<8xf32>
    %12 = vector.multi_reduction <maximumf>, %11, %cst_5 [1] : vector<8x8xf32> to vector<8xf32>
    %13 = vector.shape_cast %12 : vector<8xf32> to vector<8x1xf32>
    %14 = vector.broadcast %13 : vector<8x1xf32> to vector<8x8xf32>
    %15 = arith.subf %11, %14 : vector<8x8xf32>
    %16 = math.exp %15 : vector<8x8xf32>
    %cst_6 = arith.constant dense<0.000000e+00> : vector<8xf32>
    %17 = vector.multi_reduction <add>, %16, %cst_6 [1] : vector<8x8xf32> to vector<8xf32>
    %18 = vector.shape_cast %17 : vector<8xf32> to vector<8x1xf32>
    %19 = tpu.reciprocal %18 : vector<8x1xf32> -> vector<8x1xf32>
    %20 = vector.broadcast %19 : vector<8x1xf32> to vector<8x8xf32>
    %21 = arith.mulf %16, %20 : vector<8x8xf32>
    %cst_7 = arith.constant dense<0.000000e+00> : vector<8x16xf32>
    %22 = tpu.matmul %21, %9, %cst_7 {dimension_numbers = #tpu.dot_dimension_numbers<[1], [0], [0], [1], [0, 0, 1, 1], [], []>} : vector<8x8xf32>, vector<8x16xf32>, vector<8x16xf32> -> vector<8x16xf32>
    %c0_8 = arith.constant 0 : index
    %c0_9 = arith.constant 0 : index
    %23 = vector.load %arg7[%c0_8, %c0_9] : memref<8x32xf32, #tpu.memory_space<vmem>>, vector<8x16xf32>
    tpu.vector_store %arg7[%c0_8, %c0_9], %22 {strides = array<i32>} : memref<8x32xf32, #tpu.memory_space<vmem>>, vector<8x16xf32>,
    %24 = arith.index_cast %4 : i32 to index
    %c16 = arith.constant 16 : index
    %25 = vector.load %arg6[%24, %c16] : memref<8x96xf32, #tpu.memory_space<vmem>>, vector<8x16xf32>
    %c0_10 = arith.constant 0 : index
    %c48 = arith.constant 48 : index
    %26 = vector.load %arg6[%c0_10, %c48] : memref<8x96xf32, #tpu.memory_space<vmem>>, vector<8x16xf32>
    %c0_11 = arith.constant 0 : index
    %c80 = arith.constant 80 : index
    %27 = vector.load %arg6[%c0_11, %c80] : memref<8x96xf32, #tpu.memory_space<vmem>>, vector<8x16xf32>
    %cst_12 = arith.constant dense<0.000000e+00> : vector<8x8xf32>
    %28 = tpu.matmul %25, %26, %cst_12 {dimension_numbers = #tpu.dot_dimension_numbers<[1], [1], [0], [0], [0, 0, 1, 0], [], []>} : vector<8x16xf32>, vector<8x16xf32>, vector<8x8xf32> -> vector<8x8xf32>
    %29 = arith.mulf %28, %5 : vector<8x8xf32>
    %cst_13 = arith.constant dense<0xFF800000> : vector<8xf32>
    %30 = vector.multi_reduction <maximumf>, %29, %cst_13 [1] : vector<8x8xf32> to vector<8xf32>
    %31 = vector.shape_cast %30 : vector<8xf32> to vector<8x1xf32>
    %32 = vector.broadcast %31 : vector<8x1xf32> to vector<8x8xf32>
    %33 = arith.subf %29, %32 : vector<8x8xf32>
    %34 = math.exp %33 : vector<8x8xf32>
    %cst_14 = arith.constant dense<0.000000e+00> : vector<8xf32>
    %35 = vector.multi_reduction <add>, %34, %cst_14 [1] : vector<8x8xf32> to vector<8xf32>
    %36 = vector.shape_cast %35 : vector<8xf32> to vector<8x1xf32>
    %37 = tpu.reciprocal %36 : vector<8x1xf32> -> vector<8x1xf32>
    %38 = vector.broadcast %37 : vector<8x1xf32> to vector<8x8xf32>
    %39 = arith.mulf %34, %38 : vector<8x8xf32>
    %cst_15 = arith.constant dense<0.000000e+00> : vector<8x16xf32>
    %40 = tpu.matmul %39, %27, %cst_15 {dimension_numbers = #tpu.dot_dimension_numbers<[1], [0], [0], [1], [0, 0, 1, 1], [], []>} : vector<8x8xf32>, vector<8x16xf32>, vector<8x16xf32> -> vector<8x16xf32>
    %c0_16 = arith.constant 0 : index
    %c16_17 = arith.constant 16 : index
    %41 = vector.load %arg7[%c0_16, %c16_17] : memref<8x32xf32, #tpu.memory_space<vmem>>, vector<8x16xf32>
    tpu.vector_store %arg7[%c0_16, %c16_17], %40 {strides = array<i32>} : memref<8x32xf32, #tpu.memory_space<vmem>>, vector<8x16xf32>,
    %c0_18 = arith.constant 0 : index
    %c0_19 = arith.constant 0 : index
    %42 = vector.load %arg7[%c0_18, %c0_19] : memref<8x32xf32, #tpu.memory_space<vmem>>, vector<8x32xf32>
    %c0_20 = arith.constant 0 : index
    %c0_21 = arith.constant 0 : index
    %c0_22 = arith.constant 0 : index
    %43 = vector.load %arg5[%c0_20, %c0_21, %c0_22] : memref<1x8x32xf32, #tpu.memory_space<vmem>>, vector<1x8x32xf32>
    %44 = vector.shape_cast %43 : vector<1x8x32xf32> to vector<8x32xf32>
    %45 = vector.shape_cast %42 : vector<8x32xf32> to vector<1x8x32xf32>
    tpu.vector_store %arg5[%c0_20, %c0_21, %c0_22], %45 {strides = array<i32>} : memref<1x8x32xf32, #tpu.memory_space<vmem>>, vector<1x8x32xf32>,
    return
  }
  func.func @transform_0(%arg0: i32, %arg1: i32) -> (i32, i32, i32) {
    %c0_i32 = arith.constant 0 : i32
    %c0_i32_0 = arith.constant 0 : i32
    %c0_i32_1 = arith.constant 0 : i32
    return %arg0, %c0_i32, %c0_i32_0 : i32, i32, i32
  }
  func.func @transform_1(%arg0: i32, %arg1: i32) -> (i32, i32) {
    %c0_i32 = arith.constant 0 : i32
    %c0_i32_0 = arith.constant 0 : i32
    %c0_i32_1 = arith.constant 0 : i32
    return %c0_i32, %c0_i32_0 : i32, i32
  }
  func.func @transform_2(%arg0: i32, %arg1: i32) -> (i32, i32) {
    %c0_i32 = arith.constant 0 : i32
    %c0_i32_0 = arith.constant 0 : i32
    return %arg1, %c0_i32 : i32, i32
  }
  func.func @transform_3(%arg0: i32, %arg1: i32) -> (i32, i32, i32) {
    %c0_i32 = arith.constant 0 : i32
    %c0_i32_0 = arith.constant 0 : i32
    return %arg0, %arg1, %c0_i32 : i32, i32, i32
  }
}

module attributes {stable_mosaic.version = 11 : i64} {
  func.func @_self_attn_kernel(%arg0: i32, %arg1: i32, %arg2: memref<1x8x32xf32, #tpu.memory_space<vmem>>, %arg3: memref<32x96xf32, #tpu.memory_space<vmem>>, %arg4: memref<8x8xf32, #tpu.memory_space<vmem>>, %arg5: memref<1x8x32xf32, #tpu.memory_space<vmem>>, %arg6: memref<8x96xf32, #tpu.memory_space<vmem>>, %arg7: memref<8x32xf32, #tpu.memory_space<vmem>>) attributes {dimension_semantics = [#tpu.dimension_semantics<parallel>, #tpu.dimension_semantics<arbitrary>], iteration_bounds = array<i64: 2, 1>, scalar_prefetch = 0 : i64, scratch_operands = 2 : i64, tpu.core_type = #tpu.core_type<tc>, window_params = [{transform_indices = @transform_0, window_bounds = array<i64: 1, 8, 32>}, {pipeline_mode = #tpu.pipeline_mode<synchronous>, transform_indices = @transform_1, window_bounds = array<i64: 32, 96>}, {transform_indices = @transform_2, window_bounds = array<i64: 8, 8>}, {transform_indices = @transform_3, window_bounds = array<i64: 1, 8, 32>}]} {
    %c0_i32 = arith.constant 0 : i32
    %0 = arith.cmpi eq, %arg1, %c0_i32 : i32
    %1 = arith.extui %0 : i1 to i32
    %c0_i32_0 = arith.constant 0 : i32
    %2 = arith.cmpi ne, %1, %c0_i32_0 : i32
    scf.if %2 {
      %c0_23 = arith.constant 0 : index
      %c0_24 = arith.constant 0 : index
      %c0_25 = arith.constant 0 : index
      %46 = vector.load %arg2[%c0_23, %c0_24, %c0_25] : memref<1x8x32xf32, #tpu.memory_space<vmem>>, vector<1x8x32xf32>
      %47 = vector.shape_cast %46 : vector<1x8x32xf32> to vector<8x32xf32>
      %c0_26 = arith.constant 0 : index
      %c0_27 = arith.constant 0 : index
      %48 = vector.load %arg3[%c0_26, %c0_27] : memref<32x96xf32, #tpu.memory_space<vmem>>, vector<32x96xf32>
      %cst_28 = arith.constant dense<0.000000e+00> : vector<8x96xf32>
      %49 = tpu.matmul %47, %48, %cst_28 {dimension_numbers = #tpu.dot_dimension_numbers<[1], [0], [0], [1], [0, 0, 1, 1], [], []>} : vector<8x32xf32>, vector<32x96xf32>, vector<8x96xf32> -> vector<8x96xf32>
      %c0_29 = arith.constant 0 : index
      %c0_30 = arith.constant 0 : index
      %50 = vector.load %arg6[%c0_29, %c0_30] : memref<8x96xf32, #tpu.memory_space<vmem>>, vector<8x96xf32>
      tpu.vector_store %arg6[%c0_29, %c0_30], %49 {strides = array<i32>} : memref<8x96xf32, #tpu.memory_space<vmem>>, vector<8x96xf32>,
    } else {
    }
    %c8_i32 = arith.constant 8 : i32
    %3 = arith.muli %arg1, %c8_i32 : i32
    %4 = tpu.assume_multiple %3, 8 : i32
    %c0 = arith.constant 0 : index
    %c0_1 = arith.constant 0 : index
    %5 = vector.load %arg4[%c0, %c0_1] : memref<8x8xf32, #tpu.memory_space<vmem>>, vector<8x8xf32>
    %6 = arith.index_cast %4 : i32 to index
    %c0_2 = arith.constant 0 : index
    %7 = vector.load %arg6[%6, %c0_2] : memref<8x96xf32, #tpu.memory_space<vmem>>, vector<8x16xf32>
    %c0_3 = arith.constant 0 : index
    %c32 = arith.constant 32 : index
    %8 = vector.load %arg6[%c0_3, %c32] : memref<8x96xf32, #tpu.memory_space<vmem>>, vector<8x16xf32>
    %c0_4 = arith.constant 0 : index
    %c64 = arith.constant 64 : index
    %9 = vector.load %arg6[%c0_4, %c64] : memref<8x96xf32, #tpu.memory_space<vmem>>, vector<8x16xf32>
    %cst = arith.constant dense<0.000000e+00> : vector<8x8xf32>
    %10 = tpu.matmul %7, %8, %cst {dimension_numbers = #tpu.dot_dimension_numbers<[1], [1], [0], [0], [0, 0, 1, 0], [], []>} : vector<8x16xf32>, vector<8x16xf32>, vector<8x8xf32> -> vector<8x8xf32>
    %11 = arith.mulf %10, %5 : vector<8x8xf32>
    %cst_5 = arith.constant dense<0xFF800000> : vector<8xf32>
    %12 = vector.multi_reduction <maximumf>, %11, %cst_5 [1] : vector<8x8xf32> to vector<8xf32>
    %13 = vector.shape_cast %12 : vector<8xf32> to vector<8x1xf32>
    %14 = vector.broadcast %13 : vector<8x1xf32> to vector<8x8xf32>
    %15 = arith.subf %11, %14 : vector<8x8xf32>
    %16 = math.exp %15 : vector<8x8xf32>
    %cst_6 = arith.constant dense<0.000000e+00> : vector<8xf32>
    %17 = vector.multi_reduction <add>, %16, %cst_6 [1] : vector<8x8xf32> to vector<8xf32>
    %18 = vector.shape_cast %17 : vector<8xf32> to vector<8x1xf32>
    %19 = tpu.reciprocal %18 : vector<8x1xf32> -> vector<8x1xf32>
    %20 = vector.broadcast %19 : vector<8x1xf32> to vector<8x8xf32>
    %21 = arith.mulf %16, %20 : vector<8x8xf32>
    %cst_7 = arith.constant dense<0.000000e+00> : vector<8x16xf32>
    %22 = tpu.matmul %21, %9, %cst_7 {dimension_numbers = #tpu.dot_dimension_numbers<[1], [0], [0], [1], [0, 0, 1, 1], [], []>} : vector<8x8xf32>, vector<8x16xf32>, vector<8x16xf32> -> vector<8x16xf32>
    %c0_8 = arith.constant 0 : index
    %c0_9 = arith.constant 0 : index
    %23 = vector.load %arg7[%c0_8, %c0_9] : memref<8x32xf32, #tpu.memory_space<vmem>>, vector<8x16xf32>
    tpu.vector_store %arg7[%c0_8, %c0_9], %22 {strides = array<i32>} : memref<8x32xf32, #tpu.memory_space<vmem>>, vector<8x16xf32>,
    %24 = arith.index_cast %4 : i32 to index
    %c16 = arith.constant 16 : index
    %25 = vector.load %arg6[%24, %c16] : memref<8x96xf32, #tpu.memory_space<vmem>>, vector<8x16xf32>
    %c0_10 = arith.constant 0 : index
    %c48 = arith.constant 48 : index
    %26 = vector.load %arg6[%c0_10, %c48] : memref<8x96xf32, #tpu.memory_space<vmem>>, vector<8x16xf32>
    %c0_11 = arith.constant 0 : index
    %c80 = arith.constant 80 : index
    %27 = vector.load %arg6[%c0_11, %c80] : memref<8x96xf32, #tpu.memory_space<vmem>>, vector<8x16xf32>
    %cst_12 = arith.constant dense<0.000000e+00> : vector<8x8xf32>
    %28 = tpu.matmul %25, %26, %cst_12 {dimension_numbers = #tpu.dot_dimension_numbers<[1], [1], [0], [0], [0, 0, 1, 0], [], []>} : vector<8x16xf32>, vector<8x16xf32>, vector<8x8xf32> -> vector<8x8xf32>
    %29 = arith.mulf %28, %5 : vector<8x8xf32>
    %cst_13 = arith.constant dense<0xFF800000> : vector<8xf32>
    %30 = vector.multi_reduction <maximumf>, %29, %cst_13 [1] : vector<8x8xf32> to vector<8xf32>
    %31 = vector.shape_cast %30 : vector<8xf32> to vector<8x1xf32>
    %32 = vector.broadcast %31 : vector<8x1xf32> to vector<8x8xf32>
    %33 = arith.subf %29, %32 : vector<8x8xf32>
    %34 = math.exp %33 : vector<8x8xf32>
    %cst_14 = arith.constant dense<0.000000e+00> : vector<8xf32>
    %35 = vector.multi_reduction <add>, %34, %cst_14 [1] : vector<8x8xf32> to vector<8xf32>
    %36 = vector.shape_cast %35 : vector<8xf32> to vector<8x1xf32>
    %37 = tpu.reciprocal %36 : vector<8x1xf32> -> vector<8x1xf32>
    %38 = vector.broadcast %37 : vector<8x1xf32> to vector<8x8xf32>
    %39 = arith.mulf %34, %38 : vector<8x8xf32>
    %cst_15 = arith.constant dense<0.000000e+00> : vector<8x16xf32>
    %40 = tpu.matmul %39, %27, %cst_15 {dimension_numbers = #tpu.dot_dimension_numbers<[1], [0], [0], [1], [0, 0, 1, 1], [], []>} : vector<8x8xf32>, vector<8x16xf32>, vector<8x16xf32> -> vector<8x16xf32>
    %c0_16 = arith.constant 0 : index
    %c16_17 = arith.constant 16 : index
    %41 = vector.load %arg7[%c0_16, %c16_17] : memref<8x32xf32, #tpu.memory_space<vmem>>, vector<8x16xf32>
    tpu.vector_store %arg7[%c0_16, %c16_17], %40 {strides = array<i32>} : memref<8x32xf32, #tpu.memory_space<vmem>>, vector<8x16xf32>,
    %c0_18 = arith.constant 0 : index
    %c0_19 = arith.constant 0 : index
    %42 = vector.load %arg7[%c0_18, %c0_19] : memref<8x32xf32, #tpu.memory_space<vmem>>, vector<8x32xf32>
    %c0_20 = arith.constant 0 : index
    %c0_21 = arith.constant 0 : index
    %c0_22 = arith.constant 0 : index
    %43 = vector.load %arg5[%c0_20, %c0_21, %c0_22] : memref<1x8x32xf32, #tpu.memory_space<vmem>>, vector<1x8x32xf32>
    %44 = vector.shape_cast %43 : vector<1x8x32xf32> to vector<8x32xf32>
    %45 = vector.shape_cast %42 : vector<8x32xf32> to vector<1x8x32xf32>
    tpu.vector_store %arg5[%c0_20, %c0_21, %c0_22], %45 {strides = array<i32>} : memref<1x8x32xf32, #tpu.memory_space<vmem>>, vector<1x8x32xf32>,
    return
  }
  func.func @transform_0(%arg0: i32, %arg1: i32) -> (i32, i32, i32) {
    %c0_i32 = arith.constant 0 : i32
    %c0_i32_0 = arith.constant 0 : i32
    %c0_i32_1 = arith.constant 0 : i32
    return %arg0, %c0_i32, %c0_i32_0 : i32, i32, i32
  }
  func.func @transform_1(%arg0: i32, %arg1: i32) -> (i32, i32) {
    %c0_i32 = arith.constant 0 : i32
    %c0_i32_0 = arith.constant 0 : i32
    %c0_i32_1 = arith.constant 0 : i32
    return %c0_i32, %c0_i32_0 : i32, i32
  }
  func.func @transform_2(%arg0: i32, %arg1: i32) -> (i32, i32) {
    %c0_i32 = arith.constant 0 : i32
    %c0_i32_0 = arith.constant 0 : i32
    return %arg1, %c0_i32 : i32, i32
  }
  func.func @transform_3(%arg0: i32, %arg1: i32) -> (i32, i32, i32) {
    %c0_i32 = arith.constant 0 : i32
    %c0_i32_0 = arith.constant 0 : i32
    return %arg0, %arg1, %c0_i32 : i32, i32, i32
  }
}

</mosaic_0001>

<bundles_post_ra>
// kernel: tpu_custom_call.1
= control target key start
LH: loop header
LB: loop body
LE: loop exit
PB: predicated region body
PF: predicated region fallthrough
CT: control target
= control target key end

     0   :  { %8 = vsyncpa [#allocation5], 0  ;;  %s1065_s0 = inlined_call_operand.hbm [shape: f32[2,8,32], index: 0, kind: input, shape index: {}]   ;;  %s1066_s1 = inlined_call_operand.hbm [shape: f32[32,96], index: 1, kind: input, shape index: {}]   ;;  %s1067_s2 = inlined_call_operand.hbm [shape: f32[8,8], index: 2, kind: input, shape index: {}]   ;;  %s1068_s3 = inlined_call_operand.hbm [shape: f32[2,8,32], index: 3, kind: output, shape index: {}]  }
   0x1   :  { %10 = vsyncpa [#allocation5 + $0x1], 0 }
   0x2   :  { %11 = vsyncpa [#allocation8], 0 }
   0x3   :  { %12 = vsyncpa [#allocation6], 0 }
   0x4   :  { %14 = vsyncpa [#allocation6 + $0x1], 0  ;;  %s904_s12 = smov 0   ;;  %s906_s13 = smov 0  }
   0x5   :  { %s908_s14 = smov 0   ;;  %s910_s15 = smov 0  }
   0x6   :  { %s912_s16 = smov 0   ;;  %s914_s17 = smov 0  }
   0x7 LB: > { %s573_s18 = sadd.s32 4294967295, %s872_s17   ;;  %p575_p0 = scmp.ge.s32.totalorder %s872_s17, 1  ;;  %s872_s17 = sphi %s914_s17, %s20_s17   ;;  %s868_s16 = sphi %s912_s16, %s1078_s16   ;;  %s864_s15 = sphi %s910_s15, %s1077_s15   ;;  %s860_s14 = sphi %s908_s14, %s1076_s14   ;;  %s856_s13 = sphi %s906_s13, %s1075_s13   ;;  %s852_s12 = sphi %s904_s12, %s1074_s12  }
   0x8   : > { %p938_p1 = scmp.eq.s32.totalorder %s573_s18, 0  ;;  %p138_p2 = scmp.lt.s32.totalorder %s872_s17, 3 }
   0x9   : > { %s149_s22 = sshll.u32 %s1066_s1, 4  ;;  %s874_s24 = smov [#allocation7]   ;;  %s150_s22 = int_to_ptr.hbm [resolvable:$true] %s149_s22 }
   0xa   : > { %p946_p3 = pnand %p575_p0, %p138_p2  ;;  %s151_s25 = sshll.u32 %s874_s24, 4  ;;  %s152_s25 = int_to_ptr.vmem [resolvable:$true] %s151_s25 }
   0xb   : > { %p578_p6 = scmp.ge.s32.totalorder %s872_s17, 2  ;;  %s166_s28 = sshll.u32 %s1067_s2, 4  ;;  %s167_s28 = int_to_ptr.hbm [resolvable:$true] %s166_s28 }
   0xc   : > { %p609_p4 = pneg %p946_p3  ;;  %s875_s29 = smov 128  }
   0xd   : > { %s876_s30 = smov 8   ;;  %s877_s4 = smov [#allocation9]  }
   0xe   : > { %p610_p5 = pnand %p609_p4, %p938_p1  ;;  %s168_s5 = sshll.u32 %s877_s4, 4  ;;  %s169_s5 = int_to_ptr.vmem [resolvable:$true] %s168_s5 }
   0xf   : > { %s32_s6 = sadd.s32 1, %s868_s16  ;;  %s574_s7 = sadd.s32 4294967294, %s872_s17  }
  0x10   : > { %612 = dma.hbm_to_vmem [thread:$0]  (!%p610_p5), %s150_s22, 512, %s152_s25, [#allocation8], %s875_s29, %s875_s29, %s876_s30  }
  0x11   : > { %615 = dma.hbm_to_vmem [thread:$0]  (!%p610_p5), %s167_s28, 128, %s169_s5, [#allocation8]  }
  0x12   : > { %p34_p7 = scmp.ge.s32.totalorder %s32_s6, 2  ;;  %s39_s8 = sadd.s32 1, %s860_s14 }
  0x13   : > { %p46_p8 = scmp.ne.s32.totalorder %s860_s14, %s856_s13  ;;  %p47_p9 = scmp.eq.s32.totalorder %s872_s17, 0 }
  0x14   : > { %s1080_s6 = smov (%p34_p7, %s32_s6), 0  ;;  %p52_p10 = scmp.ne.s32.totalorder %s856_s13, %s852_s12 }
  0x15   : > { %s36_s9 = ssub.s32 %s868_s16, %s1080_s6  ;;  %p125_p11 = scmp.eq.s32.totalorder %s573_s18, 1 }
  0x16   : > { %p37_p12 = scmp.eq.s32.totalorder %s36_s9, 0  ;;  %p974_p13 = por %p938_p1, %p52_p10 }
  0x17   : > { %p978_p0 = por %p125_p11, %p46_p8  ;;  %p131_p2 = scmp.eq.s32.totalorder %s574_s7, 1 }
  0x18   : > { %s983_s20 = scalar_select %p37_p12, %s860_s14, %s39_s8  }
  0x19   : > { %p48_p4 = por %p47_p9, %p46_p8  ;;  %p985_p5 = por %p131_p2, %p52_p10 }
  0x1a   : > { %s179_s22 = sand.u32 1, %s860_s14   ;;  %s580_s18 = sshll.u32 %s868_s16, 3 }
  0x1b   : > { %p626_p7 = scmp.lt.s32.totalorder %s872_s17, 2  ;;  %s579_s24 = sshll.u32 %s179_s22, 3 }
  0x1c   : > { %s187_s27 = scalar_lea.hbm %s1065_s0, %s580_s18  ;;  %s183_s29 = scalar_lea.vmem [#allocation4], %s579_s24 }
  0x1d   : > { %s189_s28 = sshll.u32 %s187_s27, 4  ;;  %s191_s30 = sshll.u32 %s183_s29, 4  ;;  %s190_s28 = int_to_ptr.hbm [resolvable:$true] %s189_s28  ;;  %s192_s30 = int_to_ptr.vmem [resolvable:$true] %s191_s30 }
  0x1e   : > { %p617_p11 = pnand %p626_p7, %p48_p4  ;;  %s180_s4 = scalar_lea.sflag [#allocation5], %s179_s22 }
  0x1f   : > { %200 = sbr.rel (%p946_p3) target bundleno = 939 (0x3ab), region = 32  ;;  %s998_s5 = sand.u32 (!%p946_p3), 1, %s856_s13  }
  0x20   : > { %619 = dma.hbm_to_vmem [thread:$0]  (!%p617_p11), %s190_s28, 128, %s192_s30, %s180_s4  }
  0x21   : > { %s582_s7 = sshll.u32 (!%p946_p3), %s998_s5, 3  ;;  %s203_s8 = scalar_lea.sflag (!%p946_p3), [#allocation5], %s998_s5 }
  0x22   : > { %s206_s9 = scalar_lea.vmem (!%p946_p3), [#allocation4], %s582_s7 }
  0x24   : > { %839 = dma.done.wait (%p974_p13), %s203_s8, 128  }
  0x25   : > { %841 = vsyncadd (%p974_p13), %s203_s8, 4294967168 }
  0x26   : > { %843 = dma.done.wait (%p938_p1), [#allocation8], 640  }
  0x27   : > { %845 = vsyncadd (%p938_p1), [#allocation8], 4294966656  ;;  %v248_v0 = vld [vmem:[#allocation7 + $0x18] sm:$0xff]  ;;  %v247_v1 = vld [vmem:[#allocation7 + $0x10] sm:$0xff]  ;;  %vm249_vm0 = vcmask 261120   ;;  %vm273_vm1 = vcmask 785408  }
  0x28   : > { %265 = vmatpush.msra.mxu0 %v248_v0  ;;  %v246_v2 = vld [vmem:[#allocation7 + $0x8] sm:$0xff]  ;;  %v245_v3 = vld [vmem:[#allocation7] sm:$0xff]  ;;  %v244_v4 = vld [vmem:[%s206_s9] sm:$0xff]  ;;  %s878_s23 = smov 112   ;;  %s879_s19 = smov 96   ;;  %vm283_vm2 = vcmask 130048  }
  0x29   : > { %s880_s10 = smov 80   ;;  %v276_v10 = vld [vmem:[#allocation9] sm:$0xff]  ;;  %vm310_vm3 = vcmask 64512   ;;  %s881_s22 = smov 64   ;;  %vm449_vm12 = vcmask 261248  }
  0x2a   : > { %266 = vmatpush.msra.mxu0 %v247_v1  ;;  %s882_s18 = smov 48   ;;  %s883_s24 = smov 16  }
  0x2b   : > { %s594_s25 = sshll.u32 %s864_s15, 3  ;;  %s239_s29 = scalar_lea.vmem [#allocation10], %s582_s7 }
  0x2c   : > { %267 = vmatpush.msra.mxu0 %v246_v2  ;;  %s466_s28 = scalar_lea.hbm %s1068_s3, %s594_s25  ;;  %s468_s30 = sshll.u32 %s239_s29, 4  ;;  %s469_s30 = int_to_ptr.vmem [resolvable:$true] %s468_s30 }
  0x2d   : > { %s470_s4 = sshll.u32 %s466_s28, 4  ;;  %s455_s8 = scalar_lea.sflag [#allocation6], %s998_s5  ;;  %s471_s4 = int_to_ptr.hbm [resolvable:$true] %s470_s4 }
  0x2e   : > { %268 = vmatpush.msra.mxu0 %v245_v3  ;;  %s800_s9 = sshra.s32 %s471_s4, 4  ;;  %s801_s9 = int_to_ptr.hbm [resolvable:$true] %s800_s9 }
  0x2f   : > { %586 = vmatmul.msk.f32.vlgmr.msra.gmra.mxu0 %vm249_vm0, %v244_v4  ;;  %s802_s15 = scalar_lea.hbm %s801_s9, 8  ;;  %p807_p9 = scmp.lt.s32.totalorder %s801_s9, %s1068_s3 }
  0x30   : > { %p803_p1 = scmp.ne.s32.totalorder %s801_s9, %s802_s15 }
  0x32   : > { %p804_p3 = pnand %p803_p1, %p978_p0 }
  0x34   : > { %p805_p8 = pneg %p804_p3 }
  0xac   : > { %v270_v5 = vpop.f32.mrf.mxu0 }
  0xad   : > { %274 = vst.msk [vmem:[#allocation2] sm:$0xff] %vm273_vm1, %v270_v5 }
  0xb4   : > { %v362_v6 = vld [vmem:[#allocation2] sm:$0xff] }
  0xb5   : > { %365 = vrot.lane.b32.xlu1 %v362_v6, %s878_s23  ;;  %281 = vrot.lane.b32.xlu0 %v362_v6, %s879_s19 }
  0xbd   : > { %368 = vrot.lane.b32.xlu0 %v362_v6, %s880_s10  ;;  %s806_s10 = scalar_lea.hbm %s1068_s3, 16 }
  0xbe   : > { %p808_p10 = scmp.lt.s32.totalorder %s806_s10, %s802_s15 }
  0xc0   : > { %p809_p12 = por %p808_p10, %p807_p9 }
  0xc2   : > { %p810_p13 = pnand %p809_p12, %p805_p8 }
 0x127   : > { %v282_v7 = vpop.permute.xlu0 %281  ;;  %v366_v9 = vpop.permute.xlu1 %365 }
 0x128   : > { %587 = vmatpush.xpose.msk.msra.mxu1 %vm283_vm2, %v282_v7 }
 0x12b   : > { %588 = vmatmul.msk.f32.vlgmr.msra.gmra.mxu1 %vm283_vm2, %v362_v6 }
 0x12f   : > { %v369_v8 = vpop.permute.xlu0 %368 }
 0x130   : > { %590 = vmatpush.xpose.msk.msra.mxu3 %vm283_vm2, %v369_v8 }
 0x133   : > { %591 = vmatmul.msk.f32.vlgmr.msra.gmra.mxu3 %vm283_vm2, %v366_v9 }
 0x1a8   : > { %v306_v11 = vpop.f32.mrf.mxu1 }
 0x1a9   : > { %v309_v12 = vmul.f32 %v306_v11, %v276_v10 }
 0x1ab   : > { %v311_v13 = vsel %vm310_vm3, %v309_v12, -inf }
 0x1ac   : > { %312 = vmax.xlane.f32.xlu1 %v311_v13 }
 0x1b6   : > { %v391_v14 = vpop.f32.mrf.mxu3 }
 0x1b7   : > { %v394_v15 = vmul.f32 %v391_v14, %v276_v10 }
 0x1b9   : > { %v395_v16 = vsel %vm310_vm3, %v394_v15, -inf }
 0x1ba   : > { %396 = vmax.xlane.f32.xlu2 %v395_v16 }
 0x21f   : > { %v313_v17 = vpop.xlane.xlu1 %312 }
 0x220   : > { %v314_v18 = vsub.f32 %v309_v12, %v313_v17 }
 0x222   : > { %v315_v19 = vmul.f32 1.442695, %v314_v18 }
 0x224   : > { %688 = vpow2.f32 %v315_v19 }
 0x22a   : > { %v689_v20 = vpop.eup %688 }
 0x22b   : > { %v317_v21 = vsel %vm310_vm3, %v689_v20, 0.0 }
 0x22c   : > { %318 = vadd.xlane.f32.xlu2 %v317_v21 }
 0x22d   : > { %v397_v22 = vpop.xlane.xlu2 %396 }
 0x22e   : > { %v398_v23 = vsub.f32 %v394_v15, %v397_v22 }
 0x230   : > { %v399_v24 = vmul.f32 1.442695, %v398_v23 }
 0x232   : > { %690 = vpow2.f32 %v399_v24 }
 0x238   : > { %v691_v25 = vpop.eup %690 }
 0x239   : > { %v401_v26 = vsel %vm310_vm3, %v691_v25, 0.0 }
 0x23a   : > { %402 = vadd.xlane.f32.xlu0 %v401_v26 }
 0x244   : > { %335 = vrot.lane.b32.xlu2 %v362_v6, %s881_s22 }
 0x24c   : > { %419 = vrot.lane.b32.xlu2 %v362_v6, %s882_s18 }
 0x29f   : > { %v319_v27 = vpop.xlane.xlu2 %318 }
 0x2a0   : > { %692 = vrcp.f32 %v319_v27  ;;  %v331_v32 = vand.u32 2147483648, %v319_v27  ;;  %v329_v34 = vand.u32 2147483647, %v319_v27  ;;  %vm325_vm5 = vweird.f32 %v319_v27 }
 0x2a2   : > { %v332_v37 = vor.u32 1.1754944e-38, %v331_v32  ;;  %vm330_vm7 = vcmp.eq.f32.partialorder %v329_v34, 8.507059e+37 }
 0x2a6   : > { %v693_v28 = vpop.eup %692 }
 0x2a7   : > { %v321_v29 = vmul.f32 %v693_v28, %v319_v27  ;;  %v336_v30 = vpop.permute.xlu2 %335  ;;  %vm326_vm4 = vweird.f32 %v693_v28 }
 0x2a8   : > { %356 = vmatpush.msra.mxu2 %v336_v30  ;;  %vm327_vm6 = vmor %vm325_vm5, %vm326_vm4 }
 0x2a9   : > { %v322_v31 = vsub.f32 1.0, %v321_v29 }
 0x2ab   : > { %v323_v33 = vmul.f32 %v693_v28, %v322_v31 }
 0x2ad   : > { %v403_v35 = vpop.xlane.xlu0 %402  ;;  %v324_v36 = vadd.f32 %v693_v28, %v323_v33 }
 0x2ae   : > { %694 = vrcp.f32 %v403_v35  ;;  %v415_v45 = vand.u32 2147483648, %v403_v35  ;;  %v413_v47 = vand.u32 2147483647, %v403_v35  ;;  %vm409_vm9 = vweird.f32 %v403_v35 }
 0x2af   : > { %v420_v38 = vpop.permute.xlu2 %419  ;;  %v328_v39 = vsel %vm327_vm6, %v693_v28, %v324_v36 }
 0x2b0   : > { %440 = vmatpush.msrb.mxu2 %v420_v38  ;;  %v333_v40 = vsel %vm330_vm7, %v332_v37, %v328_v39  ;;  %v416_v49 = vor.u32 1.1754944e-38, %v415_v45  ;;  %vm414_vm11 = vcmp.eq.f32.partialorder %v413_v47, 8.507059e+37 }
 0x2b1   : > { %v334_v41 = vmul.f32 %v689_v20, %v333_v40 }
 0x2b3   : > { %589 = vmatmul.msk.f32.vlgmr.msra.gmra.mxu2 %vm310_vm3, %v334_v41 }
 0x2b4   : > { %v695_v42 = vpop.eup %694 }
 0x2b5   : > { %v405_v43 = vmul.f32 %v695_v42, %v403_v35  ;;  %vm410_vm8 = vweird.f32 %v695_v42 }
 0x2b6   : > { %vm411_vm10 = vmor %vm409_vm9, %vm410_vm8 }
 0x2b7   : > { %v406_v44 = vsub.f32 1.0, %v405_v43 }
 0x2b9   : > { %v407_v46 = vmul.f32 %v695_v42, %v406_v44 }
 0x2bb   : > { %v408_v48 = vadd.f32 %v695_v42, %v407_v46 }
 0x2bd   : > { %v412_v50 = vsel %vm411_vm10, %v695_v42, %v408_v48 }
 0x2be   : > { %v417_v51 = vsel %vm414_vm11, %v416_v49, %v412_v50 }
 0x2bf   : > { %v418_v52 = vmul.f32 %v691_v25, %v417_v51 }
 0x2c1   : > { %592 = vmatmul.msk.f32.vlgmr.msrb.gmra.mxu2 %vm310_vm3, %v418_v52 }
 0x336   : > { %v358_v53 = vpop.f32.mrf.mxu2 }
 0x337   : > { %361 = vst.msk [vmem:[#allocation3] sm:$0xff] %vm283_vm2, %v358_v53 }
 0x344   : > { %v442_v54 = vpop.f32.mrf.mxu2 }
 0x345   : > { %446 = vrot.lane.b32.xlu2 %v442_v54, %s883_s24 }
 0x39f   : > { %v447_v55 = vpop.permute.xlu2 %446 }
 0x3a0   : > { %450 = vst.msk [vmem:[#allocation3] sm:$0xff] %vm449_vm12, %v447_v55 }
 0x3a7   : > { %v451_v56 = vld [vmem:[#allocation3] sm:$0xff] }
 0x3a8   : > { %453 = vst.msk [vmem:[%s239_s29] sm:$0xff] %vm249_vm0, %v451_v56 }
 0x3a9   : > { %813 = shalt.err (!%p810_p13)
}
 0x3aa   : > { %607 = dma.vmem_to_hbm [thread:$0]  (%p978_p0), %s469_s30, 128, %s471_s4, %s455_s8  }
 0x3ab PF: > { %s482_s5 = sand.u32 1, %s852_s12   ;;  %p621_p2 = pnand %p578_p6, %p985_p5 }
 0x3ac   : > { %s483_s18 = scalar_lea.sflag [#allocation6], %s482_s5 }
 0x3ad   : > { %p622_p4 = pneg %p621_p2 }
 0x3af   : > { %847 = dma.done.wait (%p622_p4), %s483_s18, 128  }
 0x3b0   : > { %849 = vsyncadd (%p622_p4), %s483_s18, 4294967168  ;;  %s20_s17 = sadd.s32 1, %s872_s17   ;;  %s1074_s12 = smov %s856_s13 }
 0x3b1   : > { %p17_p7 = scmp.ge.s32.totalorder %s20_s17, 4   ;;  %s1075_s13 = smov %s860_s14 }
 0x3b2   : > { %s1076_s14 = smov %s983_s20  ;;  %s1077_s15 = smov %s868_s16 }
 0x3b3   : > { %s1078_s16 = smov %s1080_s6  ;;  %19 = sbr.rel (!%p17_p7) target bundleno = 7 (0x7), region = 91 }
 0x3b8   :  { %489 = vsyncpa [#allocation5], 1 }
 0x3b9   :  { %491 = vsyncpa [#allocation5 + $0x1], 1 }
 0x3ba   :  { %492 = vsyncpa [#allocation8], 1 }
 0x3bb   :  { %493 = vsyncpa [#allocation6], 1 }
 0x3bc   :  { %495 = vsyncpa [#allocation6 + $0x1], 1 }

// kernel: tpu_custom_call.1
= control target key start
LH: loop header
LB: loop body
LE: loop exit
PB: predicated region body
PF: predicated region fallthrough
CT: control target
= control target key end

     0   :  { %8 = vsyncpa [#allocation5], 0  ;;  %s1065_s0 = inlined_call_operand.hbm [shape: f32[2,8,32], index: 0, kind: input, shape index: {}]   ;;  %s1066_s1 = inlined_call_operand.hbm [shape: f32[32,96], index: 1, kind: input, shape index: {}]   ;;  %s1067_s2 = inlined_call_operand.hbm [shape: f32[8,8], index: 2, kind: input, shape index: {}]   ;;  %s1068_s3 = inlined_call_operand.hbm [shape: f32[2,8,32], index: 3, kind: output, shape index: {}]  }
   0x1   :  { %10 = vsyncpa [#allocation5 + $0x1], 0 }
   0x2   :  { %11 = vsyncpa [#allocation8], 0 }
   0x3   :  { %12 = vsyncpa [#allocation6], 0 }
   0x4   :  { %14 = vsyncpa [#allocation6 + $0x1], 0  ;;  %s904_s12 = smov 0   ;;  %s906_s13 = smov 0  }
   0x5   :  { %s908_s14 = smov 0   ;;  %s910_s15 = smov 0  }
   0x6   :  { %s912_s16 = smov 0   ;;  %s914_s17 = smov 0  }
   0x7 LB: > { %s573_s18 = sadd.s32 4294967295, %s872_s17   ;;  %p575_p0 = scmp.ge.s32.totalorder %s872_s17, 1  ;;  %s872_s17 = sphi %s914_s17, %s20_s17   ;;  %s868_s16 = sphi %s912_s16, %s1078_s16   ;;  %s864_s15 = sphi %s910_s15, %s1077_s15   ;;  %s860_s14 = sphi %s908_s14, %s1076_s14   ;;  %s856_s13 = sphi %s906_s13, %s1075_s13   ;;  %s852_s12 = sphi %s904_s12, %s1074_s12  }
   0x8   : > { %p938_p1 = scmp.eq.s32.totalorder %s573_s18, 0  ;;  %p138_p2 = scmp.lt.s32.totalorder %s872_s17, 3 }
   0x9   : > { %s149_s22 = sshll.u32 %s1066_s1, 4  ;;  %s874_s24 = smov [#allocation7]   ;;  %s150_s22 = int_to_ptr.hbm [resolvable:$true] %s149_s22 }
   0xa   : > { %p946_p3 = pnand %p575_p0, %p138_p2  ;;  %s151_s25 = sshll.u32 %s874_s24, 4  ;;  %s152_s25 = int_to_ptr.vmem [resolvable:$true] %s151_s25 }
   0xb   : > { %p578_p6 = scmp.ge.s32.totalorder %s872_s17, 2  ;;  %s166_s28 = sshll.u32 %s1067_s2, 4  ;;  %s167_s28 = int_to_ptr.hbm [resolvable:$true] %s166_s28 }
   0xc   : > { %p609_p4 = pneg %p946_p3  ;;  %s875_s29 = smov 128  }
   0xd   : > { %s876_s30 = smov 8   ;;  %s877_s4 = smov [#allocation9]  }
   0xe   : > { %p610_p5 = pnand %p609_p4, %p938_p1  ;;  %s168_s5 = sshll.u32 %s877_s4, 4  ;;  %s169_s5 = int_to_ptr.vmem [resolvable:$true] %s168_s5 }
   0xf   : > { %s32_s6 = sadd.s32 1, %s868_s16  ;;  %s574_s7 = sadd.s32 4294967294, %s872_s17  }
  0x10   : > { %612 = dma.hbm_to_vmem [thread:$0]  (!%p610_p5), %s150_s22, 512, %s152_s25, [#allocation8], %s875_s29, %s875_s29, %s876_s30  }
  0x11   : > { %615 = dma.hbm_to_vmem [thread:$0]  (!%p610_p5), %s167_s28, 128, %s169_s5, [#allocation8]  }
  0x12   : > { %p34_p7 = scmp.ge.s32.totalorder %s32_s6, 2  ;;  %s39_s8 = sadd.s32 1, %s860_s14 }
  0x13   : > { %p46_p8 = scmp.ne.s32.totalorder %s860_s14, %s856_s13  ;;  %p47_p9 = scmp.eq.s32.totalorder %s872_s17, 0 }
  0x14   : > { %s1080_s6 = smov (%p34_p7, %s32_s6), 0  ;;  %p52_p10 = scmp.ne.s32.totalorder %s856_s13, %s852_s12 }
  0x15   : > { %s36_s9 = ssub.s32 %s868_s16, %s1080_s6  ;;  %p125_p11 = scmp.eq.s32.totalorder %s573_s18, 1 }
  0x16   : > { %p37_p12 = scmp.eq.s32.totalorder %s36_s9, 0  ;;  %p974_p13 = por %p938_p1, %p52_p10 }
  0x17   : > { %p978_p0 = por %p125_p11, %p46_p8  ;;  %p131_p2 = scmp.eq.s32.totalorder %s574_s7, 1 }
  0x18   : > { %s983_s20 = scalar_select %p37_p12, %s860_s14, %s39_s8  }
  0x19   : > { %p48_p4 = por %p47_p9, %p46_p8  ;;  %p985_p5 = por %p131_p2, %p52_p10 }
  0x1a   : > { %s179_s22 = sand.u32 1, %s860_s14   ;;  %s580_s18 = sshll.u32 %s868_s16, 3 }
  0x1b   : > { %p626_p7 = scmp.lt.s32.totalorder %s872_s17, 2  ;;  %s579_s24 = sshll.u32 %s179_s22, 3 }
  0x1c   : > { %s187_s27 = scalar_lea.hbm %s1065_s0, %s580_s18  ;;  %s183_s29 = scalar_lea.vmem [#allocation4], %s579_s24 }
  0x1d   : > { %s189_s28 = sshll.u32 %s187_s27, 4  ;;  %s191_s30 = sshll.u32 %s183_s29, 4  ;;  %s190_s28 = int_to_ptr.hbm [resolvable:$true] %s189_s28  ;;  %s192_s30 = int_to_ptr.vmem [resolvable:$true] %s191_s30 }
  0x1e   : > { %p617_p11 = pnand %p626_p7, %p48_p4  ;;  %s180_s4 = scalar_lea.sflag [#allocation5], %s179_s22 }
  0x1f   : > { %200 = sbr.rel (%p946_p3) target bundleno = 939 (0x3ab), region = 32  ;;  %s998_s5 = sand.u32 (!%p946_p3), 1, %s856_s13  }
  0x20   : > { %619 = dma.hbm_to_vmem [thread:$0]  (!%p617_p11), %s190_s28, 128, %s192_s30, %s180_s4  }
  0x21   : > { %s582_s7 = sshll.u32 (!%p946_p3), %s998_s5, 3  ;;  %s203_s8 = scalar_lea.sflag (!%p946_p3), [#allocation5], %s998_s5 }
  0x22   : > { %s206_s9 = scalar_lea.vmem (!%p946_p3), [#allocation4], %s582_s7 }
  0x24   : > { %839 = dma.done.wait (%p974_p13), %s203_s8, 128  }
  0x25   : > { %841 = vsyncadd (%p974_p13), %s203_s8, 4294967168 }
  0x26   : > { %843 = dma.done.wait (%p938_p1), [#allocation8], 640  }
  0x27   : > { %845 = vsyncadd (%p938_p1), [#allocation8], 4294966656  ;;  %v248_v0 = vld [vmem:[#allocation7 + $0x18] sm:$0xff]  ;;  %v247_v1 = vld [vmem:[#allocation7 + $0x10] sm:$0xff]  ;;  %vm249_vm0 = vcmask 261120   ;;  %vm273_vm1 = vcmask 785408  }
  0x28   : > { %265 = vmatpush.msra.mxu0 %v248_v0  ;;  %v246_v2 = vld [vmem:[#allocation7 + $0x8] sm:$0xff]  ;;  %v245_v3 = vld [vmem:[#allocation7] sm:$0xff]  ;;  %v244_v4 = vld [vmem:[%s206_s9] sm:$0xff]  ;;  %s878_s23 = smov 112   ;;  %s879_s19 = smov 96   ;;  %vm283_vm2 = vcmask 130048  }
  0x29   : > { %s880_s10 = smov 80   ;;  %v276_v10 = vld [vmem:[#allocation9] sm:$0xff]  ;;  %vm310_vm3 = vcmask 64512   ;;  %s881_s22 = smov 64   ;;  %vm449_vm12 = vcmask 261248  }
  0x2a   : > { %266 = vmatpush.msra.mxu0 %v247_v1  ;;  %s882_s18 = smov 48   ;;  %s883_s24 = smov 16  }
  0x2b   : > { %s594_s25 = sshll.u32 %s864_s15, 3  ;;  %s239_s29 = scalar_lea.vmem [#allocation10], %s582_s7 }
  0x2c   : > { %267 = vmatpush.msra.mxu0 %v246_v2  ;;  %s466_s28 = scalar_lea.hbm %s1068_s3, %s594_s25  ;;  %s468_s30 = sshll.u32 %s239_s29, 4  ;;  %s469_s30 = int_to_ptr.vmem [resolvable:$true] %s468_s30 }
  0x2d   : > { %s470_s4 = sshll.u32 %s466_s28, 4  ;;  %s455_s8 = scalar_lea.sflag [#allocation6], %s998_s5  ;;  %s471_s4 = int_to_ptr.hbm [resolvable:$true] %s470_s4 }
  0x2e   : > { %268 = vmatpush.msra.mxu0 %v245_v3  ;;  %s800_s9 = sshra.s32 %s471_s4, 4  ;;  %s801_s9 = int_to_ptr.hbm [resolvable:$true] %s800_s9 }
  0x2f   : > { %586 = vmatmul.msk.f32.vlgmr.msra.gmra.mxu0 %vm249_vm0, %v244_v4  ;;  %s802_s15 = scalar_lea.hbm %s801_s9, 8  ;;  %p807_p9 = scmp.lt.s32.totalorder %s801_s9, %s1068_s3 }
  0x30   : > { %p803_p1 = scmp.ne.s32.totalorder %s801_s9, %s802_s15 }
  0x32   : > { %p804_p3 = pnand %p803_p1, %p978_p0 }
  0x34   : > { %p805_p8 = pneg %p804_p3 }
  0xac   : > { %v270_v5 = vpop.f32.mrf.mxu0 }
  0xad   : > { %274 = vst.msk [vmem:[#allocation2] sm:$0xff] %vm273_vm1, %v270_v5 }
  0xb4   : > { %v362_v6 = vld [vmem:[#allocation2] sm:$0xff] }
  0xb5   : > { %365 = vrot.lane.b32.xlu1 %v362_v6, %s878_s23  ;;  %281 = vrot.lane.b32.xlu0 %v362_v6, %s879_s19 }
  0xbd   : > { %368 = vrot.lane.b32.xlu0 %v362_v6, %s880_s10  ;;  %s806_s10 = scalar_lea.hbm %s1068_s3, 16 }
  0xbe   : > { %p808_p10 = scmp.lt.s32.totalorder %s806_s10, %s802_s15 }
  0xc0   : > { %p809_p12 = por %p808_p10, %p807_p9 }
  0xc2   : > { %p810_p13 = pnand %p809_p12, %p805_p8 }
 0x127   : > { %v282_v7 = vpop.permute.xlu0 %281  ;;  %v366_v9 = vpop.permute.xlu1 %365 }
 0x128   : > { %587 = vmatpush.xpose.msk.msra.mxu1 %vm283_vm2, %v282_v7 }
 0x12b   : > { %588 = vmatmul.msk.f32.vlgmr.msra.gmra.mxu1 %vm283_vm2, %v362_v6 }
 0x12f   : > { %v369_v8 = vpop.permute.xlu0 %368 }
 0x130   : > { %590 = vmatpush.xpose.msk.msra.mxu3 %vm283_vm2, %v369_v8 }
 0x133   : > { %591 = vmatmul.msk.f32.vlgmr.msra.gmra.mxu3 %vm283_vm2, %v366_v9 }
 0x1a8   : > { %v306_v11 = vpop.f32.mrf.mxu1 }
 0x1a9   : > { %v309_v12 = vmul.f32 %v306_v11, %v276_v10 }
 0x1ab   : > { %v311_v13 = vsel %vm310_vm3, %v309_v12, -inf }
 0x1ac   : > { %312 = vmax.xlane.f32.xlu1 %v311_v13 }
 0x1b6   : > { %v391_v14 = vpop.f32.mrf.mxu3 }
 0x1b7   : > { %v394_v15 = vmul.f32 %v391_v14, %v276_v10 }
 0x1b9   : > { %v395_v16 = vsel %vm310_vm3, %v394_v15, -inf }
 0x1ba   : > { %396 = vmax.xlane.f32.xlu2 %v395_v16 }
 0x21f   : > { %v313_v17 = vpop.xlane.xlu1 %312 }
 0x220   : > { %v314_v18 = vsub.f32 %v309_v12, %v313_v17 }
 0x222   : > { %v315_v19 = vmul.f32 1.442695, %v314_v18 }
 0x224   : > { %688 = vpow2.f32 %v315_v19 }
 0x22a   : > { %v689_v20 = vpop.eup %688 }
 0x22b   : > { %v317_v21 = vsel %vm310_vm3, %v689_v20, 0.0 }
 0x22c   : > { %318 = vadd.xlane.f32.xlu2 %v317_v21 }
 0x22d   : > { %v397_v22 = vpop.xlane.xlu2 %396 }
 0x22e   : > { %v398_v23 = vsub.f32 %v394_v15, %v397_v22 }
 0x230   : > { %v399_v24 = vmul.f32 1.442695, %v398_v23 }
 0x232   : > { %690 = vpow2.f32 %v399_v24 }
 0x238   : > { %v691_v25 = vpop.eup %690 }
 0x239   : > { %v401_v26 = vsel %vm310_vm3, %v691_v25, 0.0 }
 0x23a   : > { %402 = vadd.xlane.f32.xlu0 %v401_v26 }
 0x244   : > { %335 = vrot.lane.b32.xlu2 %v362_v6, %s881_s22 }
 0x24c   : > { %419 = vrot.lane.b32.xlu2 %v362_v6, %s882_s18 }
 0x29f   : > { %v319_v27 = vpop.xlane.xlu2 %318 }
 0x2a0   : > { %692 = vrcp.f32 %v319_v27  ;;  %v331_v32 = vand.u32 2147483648, %v319_v27  ;;  %v329_v34 = vand.u32 2147483647, %v319_v27  ;;  %vm325_vm5 = vweird.f32 %v319_v27 }
 0x2a2   : > { %v332_v37 = vor.u32 1.1754944e-38, %v331_v32  ;;  %vm330_vm7 = vcmp.eq.f32.partialorder %v329_v34, 8.507059e+37 }
 0x2a6   : > { %v693_v28 = vpop.eup %692 }
 0x2a7   : > { %v321_v29 = vmul.f32 %v693_v28, %v319_v27  ;;  %v336_v30 = vpop.permute.xlu2 %335  ;;  %vm326_vm4 = vweird.f32 %v693_v28 }
 0x2a8   : > { %356 = vmatpush.msra.mxu2 %v336_v30  ;;  %vm327_vm6 = vmor %vm325_vm5, %vm326_vm4 }
 0x2a9   : > { %v322_v31 = vsub.f32 1.0, %v321_v29 }
 0x2ab   : > { %v323_v33 = vmul.f32 %v693_v28, %v322_v31 }
 0x2ad   : > { %v403_v35 = vpop.xlane.xlu0 %402  ;;  %v324_v36 = vadd.f32 %v693_v28, %v323_v33 }
 0x2ae   : > { %694 = vrcp.f32 %v403_v35  ;;  %v415_v45 = vand.u32 2147483648, %v403_v35  ;;  %v413_v47 = vand.u32 2147483647, %v403_v35  ;;  %vm409_vm9 = vweird.f32 %v403_v35 }
 0x2af   : > { %v420_v38 = vpop.permute.xlu2 %419  ;;  %v328_v39 = vsel %vm327_vm6, %v693_v28, %v324_v36 }
 0x2b0   : > { %440 = vmatpush.msrb.mxu2 %v420_v38  ;;  %v333_v40 = vsel %vm330_vm7, %v332_v37, %v328_v39  ;;  %v416_v49 = vor.u32 1.1754944e-38, %v415_v45  ;;  %vm414_vm11 = vcmp.eq.f32.partialorder %v413_v47, 8.507059e+37 }
 0x2b1   : > { %v334_v41 = vmul.f32 %v689_v20, %v333_v40 }
 0x2b3   : > { %589 = vmatmul.msk.f32.vlgmr.msra.gmra.mxu2 %vm310_vm3, %v334_v41 }
 0x2b4   : > { %v695_v42 = vpop.eup %694 }
 0x2b5   : > { %v405_v43 = vmul.f32 %v695_v42, %v403_v35  ;;  %vm410_vm8 = vweird.f32 %v695_v42 }
 0x2b6   : > { %vm411_vm10 = vmor %vm409_vm9, %vm410_vm8 }
 0x2b7   : > { %v406_v44 = vsub.f32 1.0, %v405_v43 }
 0x2b9   : > { %v407_v46 = vmul.f32 %v695_v42, %v406_v44 }
 0x2bb   : > { %v408_v48 = vadd.f32 %v695_v42, %v407_v46 }
 0x2bd   : > { %v412_v50 = vsel %vm411_vm10, %v695_v42, %v408_v48 }
 0x2be   : > { %v417_v51 = vsel %vm414_vm11, %v416_v49, %v412_v50 }
 0x2bf   : > { %v418_v52 = vmul.f32 %v691_v25, %v417_v51 }
 0x2c1   : > { %592 = vmatmul.msk.f32.vlgmr.msrb.gmra.mxu2 %vm310_vm3, %v418_v52 }
 0x336   : > { %v358_v53 = vpop.f32.mrf.mxu2 }
 0x337   : > { %361 = vst.msk [vmem:[#allocation3] sm:$0xff] %vm283_vm2, %v358_v53 }
 0x344   : > { %v442_v54 = vpop.f32.mrf.mxu2 }
 0x345   : > { %446 = vrot.lane.b32.xlu2 %v442_v54, %s883_s24 }
 0x39f   : > { %v447_v55 = vpop.permute.xlu2 %446 }
 0x3a0   : > { %450 = vst.msk [vmem:[#allocation3] sm:$0xff] %vm449_vm12, %v447_v55 }
 0x3a7   : > { %v451_v56 = vld [vmem:[#allocation3] sm:$0xff] }
 0x3a8   : > { %453 = vst.msk [vmem:[%s239_s29] sm:$0xff] %vm249_vm0, %v451_v56 }
 0x3a9   : > { %813 = shalt.err (!%p810_p13)
}
 0x3aa   : > { %607 = dma.vmem_to_hbm [thread:$0]  (%p978_p0), %s469_s30, 128, %s471_s4, %s455_s8  }
 0x3ab PF: > { %s482_s5 = sand.u32 1, %s852_s12   ;;  %p621_p2 = pnand %p578_p6, %p985_p5 }
 0x3ac   : > { %s483_s18 = scalar_lea.sflag [#allocation6], %s482_s5 }
 0x3ad   : > { %p622_p4 = pneg %p621_p2 }
 0x3af   : > { %847 = dma.done.wait (%p622_p4), %s483_s18, 128  }
 0x3b0   : > { %849 = vsyncadd (%p622_p4), %s483_s18, 4294967168  ;;  %s20_s17 = sadd.s32 1, %s872_s17   ;;  %s1074_s12 = smov %s856_s13 }
 0x3b1   : > { %p17_p7 = scmp.ge.s32.totalorder %s20_s17, 4   ;;  %s1075_s13 = smov %s860_s14 }
 0x3b2   : > { %s1076_s14 = smov %s983_s20  ;;  %s1077_s15 = smov %s868_s16 }
 0x3b3   : > { %s1078_s16 = smov %s1080_s6  ;;  %19 = sbr.rel (!%p17_p7) target bundleno = 7 (0x7), region = 91 }
 0x3b8   :  { %489 = vsyncpa [#allocation5], 1 }
 0x3b9   :  { %491 = vsyncpa [#allocation5 + $0x1], 1 }
 0x3ba   :  { %492 = vsyncpa [#allocation8], 1 }
 0x3bb   :  { %493 = vsyncpa [#allocation6], 1 }
 0x3bc   :  { %495 = vsyncpa [#allocation6 + $0x1], 1 }

</bundles_post_ra>
